<compile_context>
chip_gen: v7x
topology: tpu7x:2x2x1
jax: 0.10.0
libtpu: 0.0.40
codegen_flags: <defaults>
</compile_context>

<pallas_src>
import jax
import jax.numpy as jnp
from jax.experimental import pallas as pl
from jax.experimental.pallas import tpu as pltpu

CLIP_LOGITS_VALUE = 6.0
INITIAL_LOGITS_VALUE = 3.0
MULTIPLIER_SIMPLE_LOGITS_VALUE = 0.01


def _orbit_kernel(packed_ref, out_ref):
    C = out_ref.shape[0]

    p_aug = packed_ref[0:10, 0:9]               # (10, 9)  im2col + ones row
    wdw_e = packed_ref[0:C + 1, 16:26]          # (C+1, 10) depthwise W | bias | carrier
    w1_e = packed_ref[0:C, 32:32 + C + 1]       # (C, C+1) 1x1 W | folded bias

    # Depthwise 3x3 conv + bias (bias fused via the ones row / bias column).
    y = jnp.dot(wdw_e, p_aug, preferred_element_type=jnp.float32)   # (C+1, 9)
    y = jnp.maximum(y, 0.0)                      # ReLU; carrier row stays 100

    # Spatial mean * logits_multiplier as an MXU matmul (no XLU lane reduce).
    v = jnp.full((9, 1), MULTIPLIER_SIMPLE_LOGITS_VALUE / 9.0, jnp.float32)
    ym = jnp.dot(y, v, preferred_element_type=jnp.float32)          # (C+1, 1); ym[C] == 1

    # 1x1 conv + (0.01*b1 + 3.0), fused as the last column of w1_e.
    r = jnp.dot(w1_e, ym, preferred_element_type=jnp.float32)       # (C, 1)

    out_ref[...] = jnp.clip(r, -CLIP_LOGITS_VALUE, CLIP_LOGITS_VALUE)


def orbit_simple_logits(packed, C):
    """Runs the fused OrbitSimpleLogits forward. Returns (1, C, 1, 1) float32."""
    flops = 2 * ((C + 1) * 10 * 9 + (C + 1) * 9 * 1 + C * (C + 1) * 1)
    out = pl.pallas_call(
        _orbit_kernel,
        out_shape=jax.ShapeDtypeStruct((C, 1), jnp.float32),
        in_specs=[pl.BlockSpec(memory_space=pltpu.MemorySpace.VMEM)],
        out_specs=pl.BlockSpec(memory_space=pltpu.MemorySpace.VMEM),
        cost_estimate=pl.CostEstimate(
            flops=flops, transcendentals=0,
            bytes_accessed=16 * 128 * 4 + C * 4),
    )(packed)
    # Layout plumbing only (no device relayout inside the kernel).
    return out.reshape(1, C, 1, 1)


def build_patches(x_in):
    """Shared (taps, positions) im2col of the all-ones (1, C, 3, 3) input.

    P[t, p] = x_pad[p_r + t_r, p_c + t_c] with 'same' zero padding, so that
    (Wdw_flat @ P)[c, p] reproduces the depthwise cross-correlation exactly.
    A single shared matrix is exact ONLY because every channel of x_in is
    identical (all ones); per-channel inputs would need per-channel patches.
    """
    xp = jnp.pad(x_in[0, 0], ((1, 1), (1, 1)))  # (5, 5)
    # Column p = flattened 3x3 window for output position (u, v); row t = tap.
    cols = [xp[u:u + 3, v:v + 3].reshape(9) for u in range(3) for v in range(3)]
    return jnp.stack(cols, axis=1).astype(jnp.float32)  # (9 taps, 9 positions)


def pack_params(wdw, bdw, w1, b1, x_in):
    """One-time constant parameter prep: fold biases/affine, pack into (16,128)."""
    C = wdw.shape[0]

    # P_aug: im2col patches + a row of ones that carries the depthwise bias.
    P = build_patches(x_in)                                               # (9, 9)
    p_aug = jnp.concatenate([P, jnp.ones((1, 9), jnp.float32)], axis=0)   # (10, 9)

    # Wdw_ext: [Wdw | bdw] plus a carrier row (zeros | 1/0.01). The carrier
    # row makes y[C, :] == 100 everywhere, whose 0.01/9-scaled mean is exactly
    # 1, so it carries the folded 1x1 bias through the second GEMM.
    wdw_flat = wdw.reshape(C, 9)
    wdw_ext = jnp.concatenate([wdw_flat, bdw.reshape(C, 1)], axis=1)      # (C, 10)
    carrier = jnp.concatenate(
        [jnp.zeros((1, 9), jnp.float32),
         jnp.full((1, 1), 1.0 / MULTIPLIER_SIMPLE_LOGITS_VALUE, jnp.float32)],
        axis=1)                                                           # (1, 10)
    wdw_ext = jnp.concatenate([wdw_ext, carrier], axis=0)                 # (C+1, 10)

    # W1_ext: [W1 | 0.01*b1 + 3.0].
    w1_mat = w1.reshape(C, C)
    b1_fold = (MULTIPLIER_SIMPLE_LOGITS_VALUE * b1
               + INITIAL_LOGITS_VALUE).reshape(C, 1)
    w1_ext = jnp.concatenate([w1_mat, b1_fold], axis=1)                   # (C, C+1)

    packed = jnp.zeros((16, 128), jnp.float32)
    packed = packed.at[0:10, 0:9].set(p_aug)
    packed = packed.at[0:C + 1, 16:26].set(wdw_ext)
    packed = packed.at[0:C, 32:32 + C + 1].set(w1_ext)
    return packed


def ref_forward(x_in, wdw, bdw, w1, b1, C):
    """Pure-JAX reference matching the PyTorch module exactly."""
    y = jax.lax.conv_general_dilated(
        x_in, wdw, window_strides=(1, 1), padding='SAME',
        feature_group_count=C,
        dimension_numbers=('NCHW', 'OIHW', 'NCHW')) + bdw[None, :, None, None]
    y = jnp.maximum(y, 0.0)
    z = jax.lax.conv_general_dilated(
        y, w1, window_strides=(1, 1), padding='SAME',
        dimension_numbers=('NCHW', 'OIHW', 'NCHW')) + b1[None, :, None, None]
    m = jnp.mean(z.reshape(1, C, -1), axis=2)
    r = MULTIPLIER_SIMPLE_LOGITS_VALUE * m[0] + INITIAL_LOGITS_VALUE
    r = jnp.clip(r, -CLIP_LOGITS_VALUE, CLIP_LOGITS_VALUE)
    return r.reshape(1, C, 1, 1)


if __name__ == "__main__":
    num_logits = 8  # C

    key = jax.random.PRNGKey(0)
    k1, k2, k3, k4 = jax.random.split(key, 4)

    # Deterministic synthetic parameters (shapes match torch.nn.Conv2d init):
    #   conv_depthwise.weight: (C, 1, 3, 3), bias: (C,)
    #   conv_1x1.weight      : (C, C, 1, 1), bias: (C,)
    wdw = (jax.random.uniform(k1, (num_logits, 1, 3, 3), jnp.float32) - 0.5) * 0.6
    bdw = (jax.random.uniform(k2, (num_logits,), jnp.float32) - 0.5) * 0.6
    w1 = (jax.random.uniform(k3, (num_logits, num_logits, 1, 1), jnp.float32) - 0.5) * 0.6
    b1 = (jax.random.uniform(k4, (num_logits,), jnp.float32) - 0.5) * 0.6

    # Constant buffer from the module: x_in = ones(1, C, 3, 3)   (NCHW)
    x_in = jnp.ones((1, num_logits, 3, 3), jnp.float32)

    # One-time constant folding of all parameters into a single lane-dense block.
    # TODO(synk): since the module has no runtime input, the whole result could
    # be constant-folded outside any device hot path; kept as a kernel per spec.
    packed = pack_params(wdw, bdw, w1, b1, x_in)                   # (16, 128)

    out = orbit_simple_logits(packed, num_logits)
    out = jax.block_until_ready(out)

    ref = jax.block_until_ready(ref_forward(x_in, wdw, bdw, w1, b1, num_logits))

    assert out.shape == (1, num_logits, 1, 1)
    assert jnp.allclose(out, ref, atol=1e-5, rtol=1e-5), (out, ref)
    print("KERNEL_OK")
</pallas_src>

<mosaic_0001>
module attributes {stable_mosaic.version = 11 : i64} {
  func.func @_orbit_kernel(%arg0: memref<16x128xf32, #tpu.memory_space<vmem>>, %arg1: memref<8x1xf32, #tpu.memory_space<vmem>>) attributes {dimension_semantics = [], scalar_prefetch = 0 : i64, scratch_operands = 0 : i64, tpu.core_type = #tpu.core_type<tc>} {
    %c0 = arith.constant 0 : index
    %c0_0 = arith.constant 0 : index
    %0 = vector.load %arg0[%c0, %c0_0] : memref<16x128xf32, #tpu.memory_space<vmem>>, vector<10x9xf32>
    %c0_1 = arith.constant 0 : index
    %c16 = arith.constant 16 : index
    %1 = vector.load %arg0[%c0_1, %c16] : memref<16x128xf32, #tpu.memory_space<vmem>>, vector<9x10xf32>
    %c0_2 = arith.constant 0 : index
    %c32 = arith.constant 32 : index
    %2 = vector.load %arg0[%c0_2, %c32] : memref<16x128xf32, #tpu.memory_space<vmem>>, vector<8x9xf32>
    %cst = arith.constant dense<0.000000e+00> : vector<9x9xf32>
    %3 = tpu.matmul %1, %0, %cst {dimension_numbers = #tpu.dot_dimension_numbers<[1], [0], [0], [1], [0, 0, 1, 1], [], []>} : vector<9x10xf32>, vector<10x9xf32>, vector<9x9xf32> -> vector<9x9xf32>
    %cst_3 = arith.constant 0.000000e+00 : f32
    %4 = vector.broadcast %cst_3 : f32 to vector<9x9xf32>
    %5 = arith.maximumf %3, %4 : vector<9x9xf32>
    %cst_4 = arith.constant 0.00111111114 : f32
    %6 = vector.broadcast %cst_4 : f32 to vector<9x1xf32>
    %cst_5 = arith.constant dense<0.000000e+00> : vector<9x1xf32>
    %7 = tpu.matmul %5, %6, %cst_5 {dimension_numbers = #tpu.dot_dimension_numbers<[1], [0], [0], [1], [0, 0, 1, 1], [], []>} : vector<9x9xf32>, vector<9x1xf32>, vector<9x1xf32> -> vector<9x1xf32>
    %cst_6 = arith.constant dense<0.000000e+00> : vector<8x1xf32>
    %8 = tpu.matmul %2, %7, %cst_6 {dimension_numbers = #tpu.dot_dimension_numbers<[1], [0], [0], [1], [0, 0, 1, 1], [], []>} : vector<8x9xf32>, vector<9x1xf32>, vector<8x1xf32> -> vector<8x1xf32>
    %cst_7 = arith.constant -6.000000e+00 : f32
    %cst_8 = arith.constant 6.000000e+00 : f32
    %9 = vector.broadcast %cst_7 : f32 to vector<8x1xf32>
    %10 = arith.maximumf %9, %8 : vector<8x1xf32>
    %11 = vector.broadcast %cst_8 : f32 to vector<8x1xf32>
    %12 = arith.minimumf %11, %10 : vector<8x1xf32>
    %c0_9 = arith.constant 0 : index
    %c0_10 = arith.constant 0 : index
    %13 = vector.load %arg1[%c0_9, %c0_10] : memref<8x1xf32, #tpu.memory_space<vmem>>, vector<8x1xf32>
    tpu.vector_store %arg1[%c0_9, %c0_10], %12 {strides = array<i32>} : memref<8x1xf32, #tpu.memory_space<vmem>>, vector<8x1xf32>,
    return
  }
}

</mosaic_0001>

<bundles_post_ra>
// kernel: tpu_custom_call.1
= control target key start
LH: loop header
LB: loop body
LE: loop exit
PB: predicated region body
PF: predicated region fallthrough
CT: control target
= control target key end

     0   :  { %6 = vsyncpa [#allocation3], 0  ;;  %s378_s6 = smov [#allocation2]   ;;  %s425_s0 = inlined_call_operand.hbm [shape: f32[16,128], index: 0, kind: input, shape index: {}]   ;;  %s426_s1 = inlined_call_operand.vmem [shape: f32[8,1], index: 1, kind: output, shape index: {}]  }
   0x1   :  { %s12_s7 = sshll.u32 %s378_s6, 4  ;;  %s354_s10 = scalar_lea.hbm %s425_s0, 256  ;;  %s13_s7 = int_to_ptr.vmem [resolvable:$true] %s12_s7 }
   0x2   :  { %p355_p0 = scmp.ne.s32.totalorder %s425_s0, %s354_s10  ;;  %p358_p1 = scmp.lt.u32.totalorder %s354_s10, %s425_s0 }
   0x4   :  { %p360_p2 = pnand %p358_p1, %p355_p0 }
   0x6   :  { %363 = shalt.err (!%p360_p2)
}
   0x7   :  { %s364_s15 = scalar_lea.vmem %s13_s7, 256  ;;  %p369_p4 = scmp.lt.s32.totalorder %s13_s7, %s13_s7 }
   0x8   :  { %p365_p3 = scmp.ne.s32.totalorder %s13_s7, %s364_s15  ;;  %p370_p5 = scmp.lt.s32.totalorder %s364_s15, %s364_s15 }
   0xa   :  { %p371_p6 = por %p370_p5, %p369_p4 }
   0xc   :  { %p372_p7 = pnand %p371_p6, %p365_p3 }
   0xe   :  { %375 = shalt.err (!%p372_p7)
}
   0xf   :  { %s379_s16 = smov 128   ;;  %s380_s17 = smov 8  }
  0x10   :  { %18 = dma.hbm_to_vmem [thread:$0]  %s425_s0, 256, %s13_s7, [#allocation3], %s379_s16, %s379_s16, %s380_s17  }
  0x11   :  { %376 = dma.done.wait [#allocation3], 256  }
  0x12   :  { %377 = vsyncadd [#allocation3], 4294967040  ;;  %vm36_vm0 = vcmask 1041408   ;;  %v22_v0 = vld [vmem:[#allocation2] sm:$0xff]  ;;  %v23_v1 = vld [vmem:[#allocation2 + $0x8] sm:$0x3] }
  0x13   :  { %vm381_vm1 = vmmov 1   ;;  %s382_s20 = smov 112   ;;  %v330_v2 = vpack.c.bf16 %v23_v1, %v22_v0  ;;  %v24_v3 = vld [vmem:[#allocation2 + $0x8] sm:$0x1]  ;;  %vm31_vm3 = vcmask 80896   ;;  %vm124_vm4 = vcmask 1040384  }
  0x14   :  { %vm331_vm2 = vmpackc.low %vm36_vm0, %vm381_vm1  ;;  %27 = vrot.lane.b32.xlu0 %v22_v0, %s382_s20  ;;  %v383_v7 = vmov 0.0011138916|0.0011138916   ;;  %s384_s0 = smov 96   ;;  %vm117_vm6 = vcmask 72704   ;;  %v385_v12 = vmov 0.0|0.0   ;;  %vm386_vm7 = vmmov 0  }
  0x15   :  { %332 = vmatprep.subr.msk.bf16.mxu0 %vm331_vm2, %v330_v2  ;;  %vm412_vm5 = vmpackc.low %vm124_vm4, %vm381_vm1  ;;  %203 = vrot.lane.b32.xlu1 %v22_v0, %s384_s0  ;;  %v387_v13 = vmov 0.0   ;;  %vm282_vm8 = vcmask 7168  }
  0x16   :  { %335 = vmatpush3.bf16.msk.msra.mxu0 %vm331_vm2, %v330_v2  ;;  %337 = vmatprep.subr.msk.bf16.mxu1 %vm412_vm5, %v383_v7 }
  0x17   :  { %339 = vmatpush3.bf16.msk.msra.mxu1 %vm412_vm5, %v383_v7  ;;  %340 = vmatprep.subr.bf16.mxu0 %v385_v12 }
  0x18   :  { %29 = vrot.lane.b32.xlu0 %v24_v3, %s382_s20 }
  0x86   :  { %v28_v4 = vpop.permute.xlu0 %27 }
  0x87   :  { %313 = vmatprep.mubr.msk.f32.mxu0 %vm31_vm3, %v28_v4  ;;  %v204_v17 = vpop.permute.xlu1 %203 }
  0x8a   :  { %v30_v5 = vpop.permute.xlu0 %29 }
  0x8b   :  { %314 = vmatmul.mubr.msk.f32.vlgmr.msra.gmra.mrb[0].mxu0 %vm31_vm3, %v30_v5 }
  0x8c   :  { %327 = vmatprep.mubr.msk.f32.mxu0 %vm386_vm7, %v387_v13 }
 0x15e   :  { %v315_v8 = vpop.f32.mrb[0].mxu0 }
 0x15f   :  { %v106_v9 = vpop.f32.mrb[1].mxu0  ;;  %v116_v11 = vmax.f32 %v315_v8, 0.0 }
 0x160   :  { %v115_v10 = vmax.f32 %v106_v9, 0.0 }
 0x162   :  { %320 = vmatprep.mubr.msk.f32.mxu1 %vm117_vm6, %v115_v10 }
 0x163   :  { %321 = vmatmul.mubr.msk.f32.vlgmr.msra.gmra.mrb[0].mxu1 %vm117_vm6, %v116_v11 }
 0x236   :  { %v322_v14 = vpop.f32.mrb[0].mxu1 }
 0x237   :  { %v194_v15 = vpop.f32.mrb[1].mxu1 }
 0x238   :  { %v341_v16 = vpack.c.bf16 %v322_v14, %v194_v15 }
 0x23a   :  { %343 = vmatpush3.bf16.msk.msra.mxu0 %vm412_vm5, %v341_v16 }
 0x23d   :  { %328 = vmatmul.mubr.msk.f32.vlgmr.msra.gmra.mrb[2].mxu0 %vm117_vm6, %v204_v17 }
 0x310   :  { %v276_v18 = vpop.f32.mrb[2].mxu0 }
 0x311   :  { %v297_v19 = vclamps-f32 %v276_v18, 6.0  ;;  %v329_v20 = vpop.f32.mrb[3].mxu0 }
 0x313   :  { %283 = vst.msk [vmem:[%s426_s1] sm:$0xff] %vm282_vm8, %v297_v19 }
 0x314   :  { %288 = vsyncpa [#allocation3], 1 }

</bundles_post_ra>
